<compile_context>
chip_gen: v5e
topology: v5e:2x2
jax: 0.10.0
libtpu: 0.0.40
codegen_flags: <defaults>
</compile_context>

<pallas_src>
import jax
import jax.numpy as jnp
from jax.experimental import pallas as pl
from jax.experimental.pallas import tpu as pltpu

INPUT_DIM = 43
HIDDEN_DIM = 64
SEQ_LEN = 5
FEATURE_DIM = INPUT_DIM // SEQ_LEN          # 8
X_DIM = SEQ_LEN * FEATURE_DIM               # 40 (columns of x actually used)
HP = 128                                    # hidden padded to full lane width
MAX_BLOCK_B = 4096                          # max batch rows per grid step
MIN_BLOCK_B = 128                           # f32-sublane / lane friendly minimum
VMEM_LIMIT_BYTES = 48 * 1024 * 1024         # > v5e/v6e scoped default, < v7x physical


def _rnn_kernel(x_ref, wstack_ref, bias_ref, whh_ref, wlin_ref, blin_ref, o_ref):
    """One batch tile of the whole forward pass.

    x_ref:      (TB, 43)            VMEM  raw input rows (cols 40..42 hit zero weights)
    wstack_ref: (43, SEQ_LEN*HP)    VMEM  block-diagonal stacked W_ih^T (zero padded)
    bias_ref:   (1, SEQ_LEN*HP)     VMEM  (b_ih + b_hh) replicated per step, zero padded
    whh_ref:    (HP, HP)            VMEM  W_hh^T zero padded to 128x128
    wlin_ref:   (8, HP)             VMEM  W_lin in row 0, zero padded
    blin_ref:   (1,)                SMEM  scalar linear bias
    o_ref:      (1, TB)             VMEM  lane-dense sigmoid(logits)
    """
    # Fused input projection for all 5 time steps + single bias add.
    xw = (
        jnp.dot(x_ref[...], wstack_ref[...], preferred_element_type=jnp.float32)
        + bias_ref[...]
    )  # (TB, SEQ_LEN*HP)

    whh = whh_ref[...]

    # t = 0: h_prev = 0, so h = tanh(x_0 @ W_ih^T + b).
    h = jnp.tanh(xw[:, 0:HP])
    # Remaining steps: only the recurrent matmul + tanh is on the critical path.
    for t in range(1, SEQ_LEN):
        h = jnp.tanh(
            xw[:, t * HP:(t + 1) * HP]
            + jnp.dot(h, whh, preferred_element_type=jnp.float32)
        )

    # Lane-dense head: contract the hidden (lane) axis of both operands so the
    # logits lie along lanes. The h operand is transposed by the MXU feed / XLU
    # (128-lane aligned), not via a wrapper-side reshuffle.
    logit = jax.lax.dot_general(
        wlin_ref[...], h,
        dimension_numbers=(((1,), (1,)), ((), ())),
        preferred_element_type=jnp.float32,
    )  # (8, TB); only row 0 is real
    blin = blin_ref[0]                        # scalar from SMEM
    o_ref[...] = jax.nn.sigmoid(logit[0:1, :] + blin).astype(o_ref.dtype)


def prepare_params(w_ih, w_hh, b_ih, b_hh, w_lin, b_lin):
    """One-time weight prep: transposes, block-diag stacking, lane padding."""
    f, h = FEATURE_DIM, HIDDEN_DIM
    wih_t = jnp.transpose(w_ih).astype(jnp.float32)               # (F, H)

    # Block-diagonal stacked input projection: (INPUT_DIM, SEQ_LEN*HP).
    # Rows 40..42 stay zero so the kernel can consume x without a wrapper slice.
    wstack = jnp.zeros((INPUT_DIM, SEQ_LEN * HP), jnp.float32)
    for t in range(SEQ_LEN):
        wstack = wstack.at[t * f:(t + 1) * f, t * HP:t * HP + h].set(wih_t)

    # Combined RNN bias, replicated per step, zero padded to HP lanes.
    bias_blk = jnp.zeros((HP,), jnp.float32).at[:h].set(
        (b_ih + b_hh).astype(jnp.float32)
    )
    bias = jnp.tile(bias_blk, (SEQ_LEN,)).reshape(1, SEQ_LEN * HP)

    # Recurrent weights, zero padded to (HP, HP).
    whh_p = jnp.zeros((HP, HP), jnp.float32).at[:h, :h].set(
        jnp.transpose(w_hh).astype(jnp.float32)
    )

    # Head weights: row 0 holds W_lin, padded to 8 sublanes x HP lanes.
    wlin_p = jnp.zeros((8, HP), jnp.float32).at[0, :h].set(
        w_lin.reshape(h).astype(jnp.float32)
    )
    blin = b_lin.reshape(1).astype(jnp.float32)                   # SMEM scalar
    return wstack, bias, whh_p, wlin_p, blin


def _round_up(a, m):
    return ((a + m - 1) // m) * m


def _pick_block(batch):
    """Adaptive batch tile: big enough to amortize grid-step overhead, multiple
    of 128, and (for large batches) small enough that >= 2 tiles exist so v7x
    megacore can shard the parallel axis."""
    half = -(-batch // 2)                     # cdiv(batch, 2)
    blk = _round_up(max(half, 1), MIN_BLOCK_B)
    return min(MAX_BLOCK_B, max(MIN_BLOCK_B, blk))


@jax.jit
def rnn_forward(x, wstack, bias, whh, wlin, blin):
    """Matches RNN.forward for a 2-D input x of shape (B, INPUT_DIM)."""
    batch = x.shape[0]
    xf = x.astype(jnp.float32)                                    # (B, 43), no col slice

    block_b = _pick_block(batch)
    num_tiles = -(-batch // block_b)
    bp = num_tiles * block_b
    if bp != batch:
        xf = jnp.pad(xf, ((0, bp - batch), (0, 0)))

    sk = SEQ_LEN * HP
    out = pl.pallas_call(
        _rnn_kernel,
        out_shape=jax.ShapeDtypeStruct((1, bp), jnp.float32),
        grid=(num_tiles,),
        in_specs=[
            pl.BlockSpec((block_b, INPUT_DIM), lambda i: (i, 0)),  # x tile (full 43 cols)
            pl.BlockSpec((INPUT_DIM, sk), lambda i: (0, 0)),       # W_ih stack
            pl.BlockSpec((1, sk), lambda i: (0, 0)),               # bias
            pl.BlockSpec((HP, HP), lambda i: (0, 0)),              # W_hh
            pl.BlockSpec((8, HP), lambda i: (0, 0)),               # W_lin
            pl.BlockSpec(memory_space=pltpu.MemorySpace.SMEM),     # b_lin scalar
        ],
        out_specs=pl.BlockSpec((1, block_b), lambda i: (0, i)),    # lane-dense logits
        compiler_params=pltpu.CompilerParams(
            dimension_semantics=("parallel",),
            vmem_limit_bytes=VMEM_LIMIT_BYTES,
        ),
    )(xf, wstack, bias, whh, wlin, blin)

    return out[0, :batch].reshape(batch, 1)


def init_params(key):
    """Deterministic init mimicking PyTorch's U(-1/sqrt(H), 1/sqrt(H))."""
    ks = jax.random.split(key, 6)
    bound = 1.0 / jnp.sqrt(jnp.float32(HIDDEN_DIM))
    u = lambda k, shape: jax.random.uniform(
        k, shape, jnp.float32, minval=-bound, maxval=bound
    )
    w_ih = u(ks[0], (HIDDEN_DIM, FEATURE_DIM))
    w_hh = u(ks[1], (HIDDEN_DIM, HIDDEN_DIM))
    b_ih = u(ks[2], (HIDDEN_DIM,))
    b_hh = u(ks[3], (HIDDEN_DIM,))
    w_lin = u(ks[4], (1, HIDDEN_DIM))
    b_lin = u(ks[5], (1,))
    return w_ih, w_hh, b_ih, b_hh, w_lin, b_lin


def _reference(x, w_ih, w_hh, b_ih, b_hh, w_lin, b_lin):
    """Pure-JAX reference of the PyTorch forward, for sanity checking."""
    batch = x.shape[0]
    xs = x[:, :X_DIM].reshape(batch, SEQ_LEN, FEATURE_DIM)
    h = jnp.zeros((batch, HIDDEN_DIM), jnp.float32)
    for t in range(SEQ_LEN):
        h = jnp.tanh(xs[:, t, :] @ w_ih.T + b_ih + h @ w_hh.T + b_hh)
    return jax.nn.sigmoid(h @ w_lin.T + b_lin)


if __name__ == "__main__":
    key = jax.random.PRNGKey(0)
    k_x, k_x2, k_p = jax.random.split(key, 3)

    params = init_params(k_p)
    prepped = prepare_params(*params)

    # Small batch (matches the module's typical 2-D input path).
    batch = 2
    x = jax.random.normal(k_x, (batch, INPUT_DIM), jnp.float32)
    out = jax.block_until_ready(rnn_forward(x, *prepped))
    ref = _reference(x, *params)
    assert out.shape == (batch, 1)
    assert jnp.allclose(out, ref, atol=1e-5, rtol=1e-5), (out, ref)

    # Larger batch exercising the parallel grid (2 tiles) and tail padding.
    batch2 = 300
    x2 = jax.random.normal(k_x2, (batch2, INPUT_DIM), jnp.float32)
    out2 = jax.block_until_ready(rnn_forward(x2, *prepped))
    ref2 = _reference(x2, *params)
    assert out2.shape == (batch2, 1)
    assert jnp.allclose(out2, ref2, atol=1e-5, rtol=1e-5)

    print("KERNEL_OK")
</pallas_src>

<mosaic_0001>
module attributes {stable_mosaic.version = 11 : i64} {
  func.func @_rnn_kernel(%arg0: i32, %arg1: memref<128x43xf32, #tpu.memory_space<vmem>>, %arg2: memref<43x640xf32, #tpu.memory_space<vmem>>, %arg3: memref<1x640xf32, #tpu.memory_space<vmem>>, %arg4: memref<128x128xf32, #tpu.memory_space<vmem>>, %arg5: memref<8x128xf32, #tpu.memory_space<vmem>>, %arg6: memref<1xf32, #tpu.memory_space<smem>>, %arg7: memref<1x128xf32, #tpu.memory_space<vmem>>) attributes {dimension_semantics = [#tpu.dimension_semantics<parallel>], iteration_bounds = array<i64: 1>, scalar_prefetch = 0 : i64, scratch_operands = 0 : i64, tpu.core_type = #tpu.core_type<tc>, window_params = [{transform_indices = @transform_0, window_bounds = array<i64: 128, 43>}, {pipeline_mode = #tpu.pipeline_mode<synchronous>, transform_indices = @transform_1, window_bounds = array<i64: 43, 640>}, {pipeline_mode = #tpu.pipeline_mode<synchronous>, transform_indices = @transform_2, window_bounds = array<i64: 1, 640>}, {pipeline_mode = #tpu.pipeline_mode<synchronous>, transform_indices = @transform_3, window_bounds = array<i64: 128, 128>}, {pipeline_mode = #tpu.pipeline_mode<synchronous>, transform_indices = @transform_4, window_bounds = array<i64: 8, 128>}, {transform_indices = @transform_5, window_bounds = array<i64: 1>}, {transform_indices = @transform_6, window_bounds = array<i64: 1, 128>}]} {
    %c0 = arith.constant 0 : index
    %c0_0 = arith.constant 0 : index
    %0 = vector.load %arg1[%c0, %c0_0] : memref<128x43xf32, #tpu.memory_space<vmem>>, vector<128x43xf32>
    %c0_1 = arith.constant 0 : index
    %c0_2 = arith.constant 0 : index
    %1 = vector.load %arg2[%c0_1, %c0_2] : memref<43x640xf32, #tpu.memory_space<vmem>>, vector<43x640xf32>
    %cst = arith.constant dense<0.000000e+00> : vector<128x640xf32>
    %2 = tpu.matmul %0, %1, %cst {dimension_numbers = #tpu.dot_dimension_numbers<[1], [0], [0], [1], [0, 0, 1, 1], [], []>} : vector<128x43xf32>, vector<43x640xf32>, vector<128x640xf32> -> vector<128x640xf32>
    %c0_3 = arith.constant 0 : index
    %c0_4 = arith.constant 0 : index
    %3 = vector.load %arg3[%c0_3, %c0_4] : memref<1x640xf32, #tpu.memory_space<vmem>>, vector<1x640xf32>
    %4 = vector.broadcast %3 : vector<1x640xf32> to vector<128x640xf32>
    %5 = arith.addf %2, %4 : vector<128x640xf32>
    %c0_5 = arith.constant 0 : index
    %c0_6 = arith.constant 0 : index
    %6 = vector.load %arg4[%c0_5, %c0_6] : memref<128x128xf32, #tpu.memory_space<vmem>>, vector<128x128xf32>
    %7 = vector.extract_strided_slice %5 {offsets = [0, 0], sizes = [128, 128], strides = [1, 1]} : vector<128x640xf32> to vector<128x128xf32>
    %8 = math.tanh %7 : vector<128x128xf32>
    %9 = vector.extract_strided_slice %5 {offsets = [0, 128], sizes = [128, 128], strides = [1, 1]} : vector<128x640xf32> to vector<128x128xf32>
    %cst_7 = arith.constant dense<0.000000e+00> : vector<128x128xf32>
    %10 = tpu.matmul %8, %6, %cst_7 {dimension_numbers = #tpu.dot_dimension_numbers<[1], [0], [0], [1], [0, 0, 1, 1], [], []>} : vector<128x128xf32>, vector<128x128xf32>, vector<128x128xf32> -> vector<128x128xf32>
    %11 = arith.addf %9, %10 : vector<128x128xf32>
    %12 = math.tanh %11 : vector<128x128xf32>
    %13 = vector.extract_strided_slice %5 {offsets = [0, 256], sizes = [128, 128], strides = [1, 1]} : vector<128x640xf32> to vector<128x128xf32>
    %cst_8 = arith.constant dense<0.000000e+00> : vector<128x128xf32>
    %14 = tpu.matmul %12, %6, %cst_8 {dimension_numbers = #tpu.dot_dimension_numbers<[1], [0], [0], [1], [0, 0, 1, 1], [], []>} : vector<128x128xf32>, vector<128x128xf32>, vector<128x128xf32> -> vector<128x128xf32>
    %15 = arith.addf %13, %14 : vector<128x128xf32>
    %16 = math.tanh %15 : vector<128x128xf32>
    %17 = vector.extract_strided_slice %5 {offsets = [0, 384], sizes = [128, 128], strides = [1, 1]} : vector<128x640xf32> to vector<128x128xf32>
    %cst_9 = arith.constant dense<0.000000e+00> : vector<128x128xf32>
    %18 = tpu.matmul %16, %6, %cst_9 {dimension_numbers = #tpu.dot_dimension_numbers<[1], [0], [0], [1], [0, 0, 1, 1], [], []>} : vector<128x128xf32>, vector<128x128xf32>, vector<128x128xf32> -> vector<128x128xf32>
    %19 = arith.addf %17, %18 : vector<128x128xf32>
    %20 = math.tanh %19 : vector<128x128xf32>
    %21 = vector.extract_strided_slice %5 {offsets = [0, 512], sizes = [128, 128], strides = [1, 1]} : vector<128x640xf32> to vector<128x128xf32>
    %cst_10 = arith.constant dense<0.000000e+00> : vector<128x128xf32>
    %22 = tpu.matmul %20, %6, %cst_10 {dimension_numbers = #tpu.dot_dimension_numbers<[1], [0], [0], [1], [0, 0, 1, 1], [], []>} : vector<128x128xf32>, vector<128x128xf32>, vector<128x128xf32> -> vector<128x128xf32>
    %23 = arith.addf %21, %22 : vector<128x128xf32>
    %24 = math.tanh %23 : vector<128x128xf32>
    %c0_11 = arith.constant 0 : index
    %c0_12 = arith.constant 0 : index
    %25 = vector.load %arg5[%c0_11, %c0_12] : memref<8x128xf32, #tpu.memory_space<vmem>>, vector<8x128xf32>
    %cst_13 = arith.constant dense<0.000000e+00> : vector<8x128xf32>
    %26 = tpu.matmul %25, %24, %cst_13 {dimension_numbers = #tpu.dot_dimension_numbers<[1], [1], [0], [0], [0, 0, 1, 0], [], []>} : vector<8x128xf32>, vector<128x128xf32>, vector<8x128xf32> -> vector<8x128xf32>
    %c0_14 = arith.constant 0 : index
    %27 = memref.load %arg6[%c0_14] : memref<1xf32, #tpu.memory_space<smem>>
    %28 = vector.extract_strided_slice %26 {offsets = [0, 0], sizes = [1, 128], strides = [1, 1]} : vector<8x128xf32> to vector<1x128xf32>
    %29 = vector.broadcast %27 : f32 to vector<1x128xf32>
    %30 = arith.addf %28, %29 : vector<1x128xf32>
    %31 = arith.negf %30 : vector<1x128xf32>
    %32 = math.exp %31 : vector<1x128xf32>
    %cst_15 = arith.constant 1.000000e+00 : f32
    %33 = vector.broadcast %cst_15 : f32 to vector<1x128xf32>
    %34 = arith.addf %33, %32 : vector<1x128xf32>
    %35 = arith.divf %33, %34 : vector<1x128xf32>
    %c0_16 = arith.constant 0 : index
    %c0_17 = arith.constant 0 : index
    %36 = vector.load %arg7[%c0_16, %c0_17] : memref<1x128xf32, #tpu.memory_space<vmem>>, vector<1x128xf32>
    tpu.vector_store %arg7[%c0_16, %c0_17], %35 {strides = array<i32>} : memref<1x128xf32, #tpu.memory_space<vmem>>, vector<1x128xf32>,
    return
  }
  func.func @transform_0(%arg0: i32) -> (i32, i32) {
    %c0_i32 = arith.constant 0 : i32
    %c0_i32_0 = arith.constant 0 : i32
    return %arg0, %c0_i32 : i32, i32
  }
  func.func @transform_1(%arg0: i32) -> (i32, i32) {
    %c0_i32 = arith.constant 0 : i32
    %c0_i32_0 = arith.constant 0 : i32
    %c0_i32_1 = arith.constant 0 : i32
    return %c0_i32, %c0_i32_0 : i32, i32
  }
  func.func @transform_2(%arg0: i32) -> (i32, i32) {
    %c0_i32 = arith.constant 0 : i32
    %c0_i32_0 = arith.constant 0 : i32
    %c0_i32_1 = arith.constant 0 : i32
    return %c0_i32, %c0_i32_0 : i32, i32
  }
  func.func @transform_3(%arg0: i32) -> (i32, i32) {
    %c0_i32 = arith.constant 0 : i32
    %c0_i32_0 = arith.constant 0 : i32
    %c0_i32_1 = arith.constant 0 : i32
    return %c0_i32, %c0_i32_0 : i32, i32
  }
  func.func @transform_4(%arg0: i32) -> (i32, i32) {
    %c0_i32 = arith.constant 0 : i32
    %c0_i32_0 = arith.constant 0 : i32
    %c0_i32_1 = arith.constant 0 : i32
    return %c0_i32, %c0_i32_0 : i32, i32
  }
  func.func @transform_5(%arg0: i32) -> i32 {
    %c0_i32 = arith.constant 0 : i32
    %c0_i32_0 = arith.constant 0 : i32
    return %c0_i32 : i32
  }
  func.func @transform_6(%arg0: i32) -> (i32, i32) {
    %c0_i32 = arith.constant 0 : i32
    %c0_i32_0 = arith.constant 0 : i32
    return %c0_i32, %arg0 : i32, i32
  }
}

</mosaic_0001>

<bundles_post_ra>
// kernel: rnn_forward.1
= control target key start
LH: loop header
LB: loop body
LE: loop exit
PB: predicated region body
PF: predicated region fallthrough
CT: control target
= control target key end

     0   :  { %12 = vsyncpa [#allocation4], 0  ;;  %s2082_s0 = inlined_call_operand.vmem [shape: f32[128,43], index: 0, kind: input, shape index: {}]   ;;  %s2083_s1 = inlined_call_operand.hbm [shape: f32[43,640], index: 1, kind: input, shape index: {}]   ;;  %s2084_s2 = inlined_call_operand.hbm [shape: f32[1,640], index: 2, kind: input, shape index: {}]   ;;  %s2085_s3 = inlined_call_operand.vmem [shape: f32[128,128], index: 3, kind: input, shape index: {}]   ;;  %s2086_s4 = inlined_call_operand.hbm [shape: f32[8,128], index: 4, kind: input, shape index: {}]   ;;  %s2087_s5 = inlined_call_operand.<no memory space> [shape: f32[1], index: 5, kind: input, shape index: {}]   ;;  %s2088_s6 = inlined_call_operand.vmem [shape: f32[1,128], index: 6, kind: output, shape index: {}]  }
   0x1   :  { %13 = vsyncpa [#allocation6], 0  ;;  %s34_s23 = sshll.u32 %s2084_s2, 4  ;;  %s1335_s24 = smov [#allocation5]   ;;  %s35_s23 = int_to_ptr.hbm [resolvable:$true] %s34_s23 }
   0x2   :  { %s36_s25 = sshll.u32 %s1335_s24, 4  ;;  %s20_s28 = sshll.u32 %s2083_s1, 4  ;;  %s37_s25 = int_to_ptr.vmem [resolvable:$true] %s36_s25  ;;  %s21_s28 = int_to_ptr.hbm [resolvable:$true] %s20_s28 }
   0x3   :  { %39 = dma.hbm_to_vmem [thread:$0]  %s35_s23, 80, %s37_s25, [#allocation6]  }
   0x4   :  { %s1336_s29 = smov [#allocation3]   ;;  %s1337_s7 = smov 640  }
   0x5   :  { %s22_s30 = sshll.u32 %s1336_s29, 4  ;;  %s1338_s8 = smov 40   ;;  %s23_s30 = int_to_ptr.vmem [resolvable:$true] %s22_s30 }
   0x6   :  { %28 = dma.hbm_to_vmem [thread:$0]  %s21_s28, 3840, %s23_s30, [#allocation4], %s1337_s7, %s1337_s7, %s1338_s8  }
   0x7   :  { %s47_s2 = sshll.u32 %s2086_s4, 4  ;;  %s1339_s11 = smov [#allocation7]   ;;  %s48_s2 = int_to_ptr.hbm [resolvable:$true] %s47_s2 }
   0x8   :  { %s49_s12 = sshll.u32 %s1339_s11, 4  ;;  %s50_s12 = int_to_ptr.vmem [resolvable:$true] %s49_s12 }
   0x9   :  { %52 = dma.hbm_to_vmem [thread:$0]  %s48_s2, 128, %s50_s12, [#allocation6]  }
   0xa   :  { %1331 = dma.done.wait [#allocation4], 3840  }
   0xb   :  { %1332 = vsyncadd [#allocation4], 4294963456 }
   0xc   :  { %1333 = dma.done.wait [#allocation6], 208  }
   0xd   :  { %1334 = vsyncadd [#allocation6], 4294967088  ;;  %vm174_vm0 = vcmask 1042432   ;;  %v108_v0 = vld [vmem:[#allocation3 + $0xc8] sm:$0x7]  ;;  %v103_v1 = vld [vmem:[#allocation3 + $0xa0] sm:$0xff] }
   0xe   :  { %1071 = vmatpush.msk.msra.mxu1 %vm174_vm0, %v108_v0  ;;  %985 = vmatpush.msk.msra.mxu0 %vm174_vm0, %v108_v0  ;;  %v98_v2 = vld [vmem:[#allocation3 + $0x78] sm:$0xff]  ;;  %v93_v3 = vld [vmem:[#allocation3 + $0x50] sm:$0xff]  ;;  %v88_v4 = vld [vmem:[#allocation3 + $0x28] sm:$0xff]  ;;  %vm125_vm1 = vcmask 351232  }
   0xf   :  { %1072 = vmatpush.msk.msra.mxu2 %vm174_vm0, %v108_v0  ;;  %1073 = vmatpush.msk.msra.mxu3 %vm174_vm0, %v108_v0  ;;  %v83_v5 = vld [vmem:[#allocation3] sm:$0xff]  ;;  %v1391_v6 = vld [vmem:[%s2082_s0 + $0x28] sm:$0xff]  ;;  %v109_v8 = vld [vmem:[#allocation3 + $0xd0] sm:$0x7] }
  0x10   :  { %1074 = vmatpush.msra.mxu1 %v103_v1  ;;  %201 = vmatpush.msra.mxu0 %v103_v1  ;;  %v1396_v7 = vld [vmem:[%s2082_s0] sm:$0xff]  ;;  %v104_v9 = vld [vmem:[#allocation3 + $0xa8] sm:$0xff]  ;;  %v94_v11 = vld [vmem:[#allocation3 + $0x58] sm:$0xff] }
  0x11   :  { %1075 = vmatpush.msra.mxu2 %v103_v1  ;;  %1076 = vmatpush.msra.mxu3 %v103_v1  ;;  %v99_v10 = vld [vmem:[#allocation3 + $0x80] sm:$0xff]  ;;  %v1406_v12 = vld [vmem:[%s2082_s0 + $0x30] sm:$0xff]  ;;  %v1411_v13 = vld [vmem:[%s2082_s0 + $0x8] sm:$0xff] }
  0x12   :  { %1077 = vmatpush.msra.mxu1 %v98_v2  ;;  %202 = vmatpush.msra.mxu0 %v98_v2  ;;  %v89_v14 = vld [vmem:[#allocation3 + $0x30] sm:$0xff]  ;;  %v84_v15 = vld [vmem:[#allocation3 + $0x8] sm:$0xff]  ;;  %v1420_v16 = vld [vmem:[%s2082_s0 + $0x38] sm:$0xff] }
  0x13   :  { %1078 = vmatpush.msra.mxu2 %v98_v2  ;;  %1079 = vmatpush.msra.mxu3 %v98_v2  ;;  %v1425_v17 = vld [vmem:[%s2082_s0 + $0x10] sm:$0xff]  ;;  %v1434_v18 = vld [vmem:[%s2082_s0 + $0x40] sm:$0xff]  ;;  %v1439_v19 = vld [vmem:[%s2082_s0 + $0x18] sm:$0xff] }
  0x14   :  { %1080 = vmatpush.msra.mxu1 %v93_v3  ;;  %203 = vmatpush.msra.mxu0 %v93_v3  ;;  %v1448_v20 = vld [vmem:[%s2082_s0 + $0x20] sm:$0xff]  ;;  %v1463_v21 = vld [vmem:[%s2082_s0 + $0x48] sm:$0xff]  ;;  %v1472_v22 = vld [vmem:[%s2085_s3 + $0x78] sm:$0xff] }
  0x15   :  { %1081 = vmatpush.msra.mxu2 %v93_v3  ;;  %1082 = vmatpush.msra.mxu3 %v93_v3  ;;  %v1477_v23 = vld [vmem:[%s2082_s0 + $0x50] sm:$0xff]  ;;  %v1492_v25 = vld [vmem:[%s2082_s0 + $0x58] sm:$0xff]  ;;  %v1502_v26 = vld [vmem:[%s2085_s3 + $0x68] sm:$0xff] }
  0x16   :  { %1083 = vmatpush.msra.mxu1 %v88_v4  ;;  %204 = vmatpush.msra.mxu0 %v88_v4  ;;  %v1487_v24 = vld [vmem:[%s2085_s3 + $0x70] sm:$0xff]  ;;  %v1507_v27 = vld [vmem:[%s2082_s0 + $0x60] sm:$0xff]  ;;  %v1522_v29 = vld [vmem:[%s2082_s0 + $0x68] sm:$0xff] }
  0x17   :  { %1084 = vmatpush.msra.mxu2 %v88_v4  ;;  %1085 = vmatpush.msra.mxu3 %v88_v4  ;;  %v1517_v28 = vld [vmem:[%s2085_s3 + $0x60] sm:$0xff]  ;;  %v1532_v30 = vld [vmem:[%s2085_s3 + $0x58] sm:$0xff]  ;;  %v1537_v31 = vld [vmem:[%s2082_s0 + $0x70] sm:$0xff] }
  0x18   :  { %1086 = vmatpush.msra.mxu1 %v83_v5  ;;  %205 = vmatpush.msra.mxu0 %v83_v5  ;;  %v1547_v32 = vld [vmem:[%s2085_s3 + $0x50] sm:$0xff]  ;;  %v1552_v33 = vld [vmem:[%s2082_s0 + $0x78] sm:$0xff]  ;;  %v1560_v34 = vld [vmem:[%s2085_s3 + $0x48] sm:$0xff] }
  0x19   :  { %991 = vmatmul.msk.f32.vlgmr.msra.gmra.mxu1 %vm125_vm1, %v1391_v6  ;;  %986 = vmatmul.msk.f32.vlgmr.msra.gmra.mxu0 %vm125_vm1, %v1396_v7  ;;  %v1566_v35 = vld [vmem:[%s2085_s3 + $0x40] sm:$0xff]  ;;  %v1574_v36 = vld [vmem:[%s2085_s3 + $0x38] sm:$0xff]  ;;  %v1579_v37 = vld [vmem:[%s2085_s3 + $0x30] sm:$0xff] }
  0x1a   :  { %1002 = vmatpush.msk.msrb.mxu1 %vm174_vm0, %v109_v8  ;;  %1087 = vmatpush.msra.mxu2 %v83_v5  ;;  %v1586_v38 = vld [vmem:[%s2085_s3 + $0x28] sm:$0xff]  ;;  %v1592_v39 = vld [vmem:[%s2085_s3 + $0x20] sm:$0xff]  ;;  %v1600_v40 = vld [vmem:[%s2085_s3 + $0x18] sm:$0xff] }
  0x1b   :  { %1088 = vmatpush.msra.mxu3 %v83_v5  ;;  %995 = vmatmul.msk.f32.vlgmr.msra.gmra.mxu2 %vm125_vm1, %v1463_v21  ;;  %v1605_v41 = vld [vmem:[%s2085_s3 + $0x10] sm:$0xff]  ;;  %v110_v42 = vld [vmem:[#allocation3 + $0xd8] sm:$0x7]  ;;  %v1613_v43 = vld [vmem:[%s2085_s3 + $0x8] sm:$0xff] }
  0x1c   :  { %266 = vmatpush.msrb.mxu1 %v104_v9  ;;  %1000 = vmatmul.msk.f32.vlgmr.msra.gmra.mxu3 %vm125_vm1, %v1537_v31  ;;  %v105_v45 = vld [vmem:[#allocation3 + $0xb0] sm:$0xff]  ;;  %v1621_v46 = vld [vmem:[%s2085_s3] sm:$0xff]  ;;  %v100_v47 = vld [vmem:[#allocation3 + $0x88] sm:$0xff] }
  0x1d   :  { %1019 = vmatpush.msk.msrb.mxu2 %vm174_vm0, %v110_v42  ;;  %v95_v48 = vld [vmem:[#allocation3 + $0x60] sm:$0xff]  ;;  %v90_v49 = vld [vmem:[#allocation3 + $0x38] sm:$0xff]  ;;  %v85_v51 = vld [vmem:[#allocation3 + $0x10] sm:$0xff] }
  0x1e   :  { %267 = vmatpush.msrb.mxu1 %v99_v10  ;;  %v1637_v54 = vld [vmem:[#allocation5] sm:$0x1f] }
  0x1f   :  { %331 = vmatpush.msrb.mxu2 %v105_v45  ;;  %v1646_v55 = vperm.slane %v1637_v54, 0 }
  0x20   :  { %268 = vmatpush.msrb.mxu1 %v94_v11 }
  0x21   :  { %992 = vmatmul.msk.f32.gmra.mxu1 %vm125_vm1, %v1406_v12  ;;  %987 = vmatmul.msk.f32.gmra.mxu0 %vm125_vm1, %v1411_v13 }
  0x22   :  { %269 = vmatpush.msrb.mxu1 %v89_v14  ;;  %332 = vmatpush.msrb.mxu2 %v100_v47 }
  0x23   :  { %996 = vmatmul.msk.f32.gmra.mxu2 %vm125_vm1, %v1477_v23 }
  0x24   :  { %270 = vmatpush.msrb.mxu1 %v84_v15  ;;  %1001 = vmatmul.msk.f32.gmra.mxu3 %vm125_vm1, %v1552_v33 }
  0x25   :  { %333 = vmatpush.msrb.mxu2 %v95_v48 }
  0x26   :  { %547 = vmatpush.msra.mxu1 %v1472_v22 }
  0x27   :  { %334 = vmatpush.msrb.mxu2 %v90_v49 }
  0x28   :  { %548 = vmatpush.msra.mxu1 %v1487_v24 }
  0x29   :  { %993 = vmatmul.msk.f32.gmra.mxu1 %vm125_vm1, %v1420_v16  ;;  %988 = vmatmul.msk.f32.gmra.mxu0 %vm125_vm1, %v1425_v17 }
  0x2a   :  { %549 = vmatpush.msra.mxu1 %v1502_v26  ;;  %335 = vmatpush.msrb.mxu2 %v85_v51 }
  0x2b   :  { %997 = vmatmul.msk.f32.gmra.mxu2 %vm125_vm1, %v1492_v25 }
  0x2c   :  { %550 = vmatpush.msra.mxu1 %v1517_v28  ;;  %644 = vmatpush.msra.mxu2 %v1472_v22 }
  0x2e   :  { %551 = vmatpush.msra.mxu1 %v1532_v30  ;;  %645 = vmatpush.msra.mxu2 %v1487_v24 }
  0x30   :  { %552 = vmatpush.msra.mxu1 %v1547_v32  ;;  %646 = vmatpush.msra.mxu2 %v1502_v26 }
  0x31   :  { %994 = vmatmul.msk.f32.gmra.mxu1 %vm125_vm1, %v1434_v18  ;;  %989 = vmatmul.msk.f32.gmra.mxu0 %vm125_vm1, %v1439_v19 }
  0x32   :  { %553 = vmatpush.msra.mxu1 %v1560_v34  ;;  %647 = vmatpush.msra.mxu2 %v1517_v28 }
  0x33   :  { %998 = vmatmul.msk.f32.gmra.mxu2 %vm125_vm1, %v1507_v27 }
  0x34   :  { %554 = vmatpush.msra.mxu1 %v1566_v35  ;;  %648 = vmatpush.msra.mxu2 %v1532_v30 }
  0x36   :  { %555 = vmatpush.msra.mxu1 %v1574_v36  ;;  %649 = vmatpush.msra.mxu2 %v1547_v32 }
  0x38   :  { %556 = vmatpush.msra.mxu1 %v1579_v37  ;;  %650 = vmatpush.msra.mxu2 %v1560_v34 }
  0x39   :  { %1003 = vmatmul.msk.f32.vlgmr.msrb.gmra.mxu1 %vm125_vm1, %v1396_v7  ;;  %990 = vmatmul.msk.f32.gmra.mxu0 %vm125_vm1, %v1448_v20 }
  0x3a   :  { %557 = vmatpush.msra.mxu1 %v1586_v38  ;;  %651 = vmatpush.msra.mxu2 %v1566_v35 }
  0x3b   :  { %999 = vmatmul.msk.f32.gmra.mxu2 %vm125_vm1, %v1522_v29 }
  0x3c   :  { %558 = vmatpush.msra.mxu1 %v1592_v39  ;;  %652 = vmatpush.msra.mxu2 %v1574_v36 }
  0x3e   :  { %559 = vmatpush.msra.mxu1 %v1600_v40  ;;  %653 = vmatpush.msra.mxu2 %v1579_v37 }
  0x40   :  { %560 = vmatpush.msra.mxu1 %v1605_v41  ;;  %654 = vmatpush.msra.mxu2 %v1586_v38 }
  0x41   :  { %1004 = vmatmul.msk.f32.gmra.mxu1 %vm125_vm1, %v1411_v13 }
  0x42   :  { %561 = vmatpush.msra.mxu1 %v1613_v43  ;;  %655 = vmatpush.msra.mxu2 %v1592_v39 }
  0x43   :  { %1020 = vmatmul.msk.f32.vlgmr.msrb.gmra.mxu2 %vm125_vm1, %v1396_v7 }
  0x44   :  { %562 = vmatpush.msra.mxu1 %v1621_v46  ;;  %656 = vmatpush.msra.mxu2 %v1600_v40 }
  0x46   :  { %657 = vmatpush.msra.mxu2 %v1605_v41 }
  0x48   :  { %658 = vmatpush.msra.mxu2 %v1613_v43 }
  0x49   :  { %1005 = vmatmul.msk.f32.gmra.mxu1 %vm125_vm1, %v1425_v17 }
  0x4a   :  { %659 = vmatpush.msra.mxu2 %v1621_v46 }
  0x4b   :  { %1021 = vmatmul.msk.f32.gmra.mxu2 %vm125_vm1, %v1411_v13 }
  0x51   :  { %1006 = vmatmul.msk.f32.gmra.mxu1 %vm125_vm1, %v1439_v19 }
  0x53   :  { %1022 = vmatmul.msk.f32.gmra.mxu2 %vm125_vm1, %v1425_v17 }
  0x59   :  { %1007 = vmatmul.msk.f32.gmra.mxu1 %vm125_vm1, %v1448_v20 }
  0x5b   :  { %1023 = vmatmul.msk.f32.gmra.mxu2 %vm125_vm1, %v1439_v19 }
  0x61   :  { %1008 = vmatmul.msk.f32.gmra.mxu1 %vm125_vm1, %v1391_v6 }
  0x63   :  { %1024 = vmatmul.msk.f32.gmra.mxu2 %vm125_vm1, %v1448_v20 }
  0x69   :  { %1009 = vmatmul.msk.f32.gmra.mxu1 %vm125_vm1, %v1406_v12 }
  0x6b   :  { %1025 = vmatmul.msk.f32.gmra.mxu2 %vm125_vm1, %v1391_v6 }
  0x71   :  { %1010 = vmatmul.msk.f32.gmra.mxu1 %vm125_vm1, %v1420_v16 }
  0x73   :  { %1026 = vmatmul.msk.f32.gmra.mxu2 %vm125_vm1, %v1406_v12 }
  0x79   :  { %1011 = vmatmul.msk.f32.gmra.mxu1 %vm125_vm1, %v1434_v18 }
  0x7b   :  { %1027 = vmatmul.msk.f32.gmra.mxu2 %vm125_vm1, %v1420_v16 }
  0x81   :  { %1012 = vmatmul.msk.f32.gmra.mxu1 %vm125_vm1, %v1463_v21 }
  0x83   :  { %1028 = vmatmul.msk.f32.gmra.mxu2 %vm125_vm1, %v1434_v18 }
  0x89   :  { %1013 = vmatmul.msk.f32.gmra.mxu1 %vm125_vm1, %v1477_v23 }
  0x8b   :  { %1029 = vmatmul.msk.f32.gmra.mxu2 %vm125_vm1, %v1463_v21 }
  0x91   :  { %1014 = vmatmul.msk.f32.gmra.mxu1 %vm125_vm1, %v1492_v25 }
  0x93   :  { %1030 = vmatmul.msk.f32.gmra.mxu2 %vm125_vm1, %v1477_v23 }
  0x96   :  { %v1615_v44 = vpop.f32.mrf.mxu1  ;;  %v207_v52 = vpop.f32.mrf.mxu0 }
  0x97   :  { %v208_v57 = vadd.f32 %v207_v52, %v1646_v55  ;;  %v223_v15 = vadd.f32 %v1615_v44, %v1646_v55 }
  0x99   :  { %1015 = vmatmul.msk.f32.gmra.mxu1 %vm125_vm1, %v1507_v27  ;;  %1094 = vtanh.f32 %v208_v57 }
  0x9b   :  { %1031 = vmatmul.msk.f32.gmra.mxu2 %vm125_vm1, %v1492_v25 }
  0x9e   :  { %v1626_v50 = vpop.f32.mrf.mxu1  ;;  %v210_v56 = vpop.f32.mrf.mxu0 }
  0x9f   :  { %v211_v59 = vadd.f32 %v210_v56, %v1646_v55  ;;  %v1095_v61 = vpop.eup %1094  ;;  %v226_v45 = vadd.f32 %v1626_v50, %v1646_v55  ;;  %v234_v52 = vpop.f32.mrf.mxu2 }
  0xa1   :  { %1016 = vmatmul.msk.f32.gmra.mxu1 %vm125_vm1, %v1522_v29  ;;  %1096 = vtanh.f32 %v211_v59  ;;  %v235_v59 = vadd.f32 %v234_v52, %v1646_v55  ;;  %v249_v52 = vpop.f32.mrf.mxu3 }
  0xa3   :  { %1032 = vmatmul.msk.f32.gmra.mxu2 %vm125_vm1, %v1507_v27 }
  0xa6   :  { %v1635_v53 = vpop.f32.mrf.mxu1  ;;  %v213_v60 = vpop.f32.mrf.mxu0 }
  0xa7   :  { %v214_v63 = vadd.f32 %v213_v60, %v1646_v55  ;;  %v1097_v0 = vpop.eup %1096  ;;  %v229_v44 = vadd.f32 %v1635_v53, %v1646_v55  ;;  %v237_v53 = vpop.f32.mrf.mxu2 }
  0xa9   :  { %1017 = vmatmul.msk.f32.gmra.mxu1 %vm125_vm1, %v1537_v31  ;;  %1098 = vtanh.f32 %v214_v63 }
  0xab   :  { %1033 = vmatmul.msk.f32.gmra.mxu2 %vm125_vm1, %v1522_v29 }
  0xae   :  { %v231_v58 = vpop.f32.mrf.mxu1  ;;  %v216_v2 = vpop.f32.mrf.mxu0 }
  0xaf   :  { %v217_v3 = vadd.f32 %v216_v2, %v1646_v55  ;;  %v1099_v4 = vpop.eup %1098  ;;  %v232_v50 = vadd.f32 %v231_v58, %v1646_v55  ;;  %v238_v58 = vadd.f32 %v237_v53, %v1646_v55  ;;  %v240_v63 = vpop.f32.mrf.mxu2 }
  0xb1   :  { %1018 = vmatmul.msk.f32.gmra.mxu1 %vm125_vm1, %v1552_v33  ;;  %1100 = vtanh.f32 %v217_v3  ;;  %v241_v3 = vadd.f32 %v240_v63, %v1646_v55 }
  0xb3   :  { %1034 = vmatmul.msk.f32.gmra.mxu2 %vm125_vm1, %v1537_v31 }
  0xb6   :  { %v1660_v62 = vpop.f32.mrf.mxu1  ;;  %v219_v8 = vpop.f32.mrf.mxu0 }
  0xb7   :  { %v220_v9 = vadd.f32 %v219_v8, %v1646_v55  ;;  %v1101_v10 = vpop.eup %1100 }
  0xb9   :  { %563 = vmatmul.f32.vlgmr.msra.gmra.mxu1 %v1095_v61  ;;  %1102 = vtanh.f32 %v220_v9  ;;  %v243_v9 = vpop.f32.mrf.mxu2 }
  0xba   :  { %1104 = vtanh.f32 %v223_v15 }
  0xbb   :  { %1106 = vtanh.f32 %v226_v45  ;;  %1035 = vmatmul.msk.f32.gmra.mxu2 %vm125_vm1, %v1552_v33 }
  0xbc   :  { %1108 = vtanh.f32 %v229_v44 }
  0xbd   :  { %1110 = vtanh.f32 %v232_v50  ;;  %v250_v50 = vadd.f32 %v249_v52, %v1646_v55  ;;  %v1750_v52 = vperm.slane %v1637_v54, 1 }
  0xbe   :  { %v1669_v1 = vpop.f32.mrf.mxu1  ;;  %1112 = vtanh.f32 %v235_v59  ;;  %v252_v59 = vpop.f32.mrf.mxu3 }
  0xbf   :  { %v1103_v14 = vpop.eup %1102  ;;  %1114 = vtanh.f32 %v238_v58  ;;  %v106_v58 = vld [vmem:[#allocation3 + $0xb8] sm:$0xff] }
  0xc0   :  { %v1105_v48 = vpop.eup %1104  ;;  %1116 = vtanh.f32 %v241_v3  ;;  %v253_v3 = vadd.f32 %v252_v59, %v1646_v55 }
  0xc1   :  { %566 = vmatmul.f32.gmra.mxu1 %v1097_v0  ;;  %v1107_v51 = vpop.eup %1106  ;;  %v246_v45 = vpop.f32.mrf.mxu2 }
  0xc2   :  { %v1109_v57 = vpop.eup %1108 }
  0xc3   :  { %v1111_v61 = vpop.eup %1110 }
  0xc4   :  { %v1113_v0 = vpop.eup %1112 }
  0xc6   :  { %v1675_v5 = vpop.f32.mrf.mxu1 }
  0xc9   :  { %569 = vmatmul.f32.gmra.mxu1 %v1099_v4  ;;  %v1115_v4 = vpop.eup %1114  ;;  %v1736_v63 = vpop.f32.mrf.mxu2 }
  0xce   :  { %v1680_v11 = vpop.f32.mrf.mxu1 }
  0xd1   :  { %572 = vmatmul.f32.gmra.mxu1 %v1101_v10  ;;  %v244_v10 = vadd.f32 %v243_v9, %v1646_v55 }
  0xd3   :  { %1118 = vtanh.f32 %v244_v10  ;;  %v96_v10 = vld [vmem:[#allocation3 + $0x68] sm:$0xff] }
  0xd6   :  { %v1686_v42 = vpop.f32.mrf.mxu1 }
  0xd9   :  { %575 = vmatmul.f32.gmra.mxu1 %v1103_v14  ;;  %v1117_v14 = vpop.eup %1116 }
  0xda   :  { %v1119_v44 = vpop.eup %1118 }
  0xde   :  { %v1692_v47 = vpop.f32.mrf.mxu1 }
  0xe1   :  { %578 = vmatmul.f32.gmra.mxu1 %v1105_v48  ;;  %v247_v48 = vadd.f32 %v246_v45, %v1646_v55  ;;  %v86_v45 = vld [vmem:[#allocation3 + $0x18] sm:$0xff] }
  0xe3   :  { %1120 = vtanh.f32 %v247_v48  ;;  %v1741_v48 = vpop.f32.mrf.mxu2 }
  0xe4   :  { %1122 = vtanh.f32 %v250_v50  ;;  %v273_v50 = vadd.f32 %v1660_v62, %v1750_v52 }
  0xe5   :  { %1124 = vtanh.f32 %v253_v3 }
  0xe6   :  { %v1698_v49 = vpop.f32.mrf.mxu1 }
  0xe9   :  { %581 = vmatmul.f32.gmra.mxu1 %v1107_v51 }
  0xee   :  { %v1703_v56 = vpop.f32.mrf.mxu1 }
  0xf1   :  { %584 = vmatmul.f32.gmra.mxu1 %v1109_v57  ;;  %v1121_v57 = vpop.eup %1120 }
  0xf6   :  { %v1708_v60 = vpop.f32.mrf.mxu1 }
  0xf9   :  { %587 = vmatmul.f32.gmra.mxu1 %v1111_v61  ;;  %v111_v61 = vld [vmem:[#allocation3 + $0xe0] sm:$0x7] }
  0xfa   :  { %1036 = vmatpush.msk.msrb.mxu3 %vm174_vm0, %v111_v61  ;;  %v1759_v61 = vpop.f32.mrf.mxu2 }
  0xfc   :  { %396 = vmatpush.msrb.mxu3 %v106_v58  ;;  %v276_v58 = vadd.f32 %v1669_v1, %v1750_v52  ;;  %v279_v1 = vadd.f32 %v1675_v5, %v1750_v52  ;;  %v282_v5 = vadd.f32 %v1680_v11, %v1750_v52  ;;  %v288_v11 = vadd.f32 %v1692_v47, %v1750_v52 }
  0xfe   :  { %v1713_v2 = vpop.f32.mrf.mxu1 }
 0x101   :  { %590 = vmatmul.f32.gmra.mxu1 %v1113_v0  ;;  %v101_v0 = vld [vmem:[#allocation3 + $0x90] sm:$0xff] }
 0x102   :  { %397 = vmatpush.msrb.mxu3 %v101_v0 }
 0x104   :  { %398 = vmatpush.msrb.mxu3 %v96_v10 }
 0x106   :  { %v1718_v8 = vpop.f32.mrf.mxu1 }
 0x109   :  { %593 = vmatmul.f32.gmra.mxu1 %v1115_v4  ;;  %v1123_v4 = vpop.eup %1122 }
 0x10e   :  { %v1723_v15 = vpop.f32.mrf.mxu1 }
 0x111   :  { %596 = vmatmul.f32.gmra.mxu1 %v1117_v14  ;;  %v91_v14 = vld [vmem:[#allocation3 + $0x40] sm:$0xff] }
 0x112   :  { %399 = vmatpush.msrb.mxu3 %v91_v14 }
 0x114   :  { %400 = vmatpush.msrb.mxu3 %v86_v45 }
 0x115   :  { %1037 = vmatmul.msk.f32.vlgmr.msrb.gmra.mxu3 %vm125_vm1, %v1396_v7 }
 0x116   :  { %v1728_v51 = vpop.f32.mrf.mxu1  ;;  %741 = vmatpush.msra.mxu3 %v1472_v22 }
 0x118   :  { %742 = vmatpush.msra.mxu3 %v1487_v24 }
 0x119   :  { %599 = vmatmul.f32.gmra.mxu1 %v1119_v44  ;;  %v1125_v44 = vpop.eup %1124 }
 0x11a   :  { %743 = vmatpush.msra.mxu3 %v1502_v26 }
 0x11c   :  { %744 = vmatpush.msra.mxu3 %v1517_v28 }
 0x11d   :  { %1038 = vmatmul.msk.f32.gmra.mxu3 %vm125_vm1, %v1411_v13 }
 0x11e   :  { %v1733_v53 = vpop.f32.mrf.mxu1  ;;  %745 = vmatpush.msra.mxu3 %v1532_v30 }
 0x120   :  { %746 = vmatpush.msra.mxu3 %v1547_v32 }
 0x121   :  { %602 = vmatmul.f32.gmra.mxu1 %v1121_v57 }
 0x122   :  { %747 = vmatpush.msra.mxu3 %v1560_v34 }
 0x124   :  { %748 = vmatpush.msra.mxu3 %v1566_v35 }
 0x125   :  { %1039 = vmatmul.msk.f32.gmra.mxu3 %vm125_vm1, %v1425_v17 }
 0x126   :  { %v1739_v9 = vpop.f32.mrf.mxu1  ;;  %749 = vmatpush.msra.mxu3 %v1574_v36 }
 0x128   :  { %750 = vmatpush.msra.mxu3 %v1579_v37 }
 0x129   :  { %605 = vmatmul.f32.gmra.mxu1 %v1123_v4  ;;  %v1770_v4 = vpop.f32.mrf.mxu2 }
 0x12a   :  { %751 = vmatpush.msra.mxu3 %v1586_v38 }
 0x12c   :  { %752 = vmatpush.msra.mxu3 %v1592_v39 }
 0x12d   :  { %1040 = vmatmul.msk.f32.gmra.mxu3 %vm125_vm1, %v1439_v19 }
 0x12e   :  { %v1745_v55 = vpop.f32.mrf.mxu1  ;;  %753 = vmatpush.msra.mxu3 %v1600_v40 }
 0x130   :  { %754 = vmatpush.msra.mxu3 %v1605_v41 }
 0x131   :  { %608 = vmatmul.f32.gmra.mxu1 %v1125_v44  ;;  %v1781_v44 = vpop.f32.mrf.mxu2 }
 0x132   :  { %755 = vmatpush.msra.mxu3 %v1613_v43 }
 0x134   :  { %756 = vmatpush.msra.mxu3 %v1621_v46 }
 0x135   :  { %1041 = vmatmul.msk.f32.gmra.mxu3 %vm125_vm1, %v1448_v20 }
 0x136   :  { %v564_v57 = vpop.f32.mrf.mxu1 }
 0x137   :  { %v612_v59 = vadd.f32 %v564_v57, %v273_v50 }
 0x139   :  { %1126 = vtanh.f32 %v612_v59 }
 0x13d   :  { %1042 = vmatmul.msk.f32.gmra.mxu3 %vm125_vm1, %v1391_v6 }
 0x13e   :  { %v567_v62 = vpop.f32.mrf.mxu1 }
 0x13f   :  { %v1127_v0 = vpop.eup %1126  ;;  %v613_v3 = vadd.f32 %v567_v62, %v276_v58  ;;  %v285_v58 = vadd.f32 %v1686_v42, %v1750_v52  ;;  %v1790_v62 = vpop.f32.mrf.mxu2 }
 0x140   :  { %660 = vmatmul.f32.vlgmr.msra.gmra.mxu2 %v1127_v0 }
 0x141   :  { %1128 = vtanh.f32 %v613_v3 }
 0x145   :  { %1043 = vmatmul.msk.f32.gmra.mxu3 %vm125_vm1, %v1406_v12 }
 0x146   :  { %v570_v10 = vpop.f32.mrf.mxu1 }
 0x147   :  { %v1129_v14 = vpop.eup %1128  ;;  %v614_v45 = vadd.f32 %v570_v10, %v279_v1  ;;  %v1798_v42 = vpop.f32.mrf.mxu2 }
 0x148   :  { %663 = vmatmul.f32.gmra.mxu2 %v1129_v14 }
 0x149   :  { %1130 = vtanh.f32 %v614_v45 }
 0x14d   :  { %1044 = vmatmul.msk.f32.gmra.mxu3 %vm125_vm1, %v1420_v16 }
 0x14e   :  { %v573_v50 = vpop.f32.mrf.mxu1 }
 0x14f   :  { %v1131_v57 = vpop.eup %1130  ;;  %v615_v59 = vadd.f32 %v573_v50, %v282_v5  ;;  %v291_v5 = vadd.f32 %v1698_v49, %v1750_v52  ;;  %v1804_v47 = vpop.f32.mrf.mxu2 }
 0x150   :  { %666 = vmatmul.f32.gmra.mxu2 %v1131_v57 }
 0x151   :  { %1132 = vtanh.f32 %v615_v59 }
 0x155   :  { %1045 = vmatmul.msk.f32.gmra.mxu3 %vm125_vm1, %v1434_v18 }
 0x156   :  { %v576_v0 = vpop.f32.mrf.mxu1 }
 0x157   :  { %v1133_v3 = vpop.eup %1132  ;;  %v616_v1 = vadd.f32 %v576_v0, %v285_v58  ;;  %v294_v58 = vadd.f32 %v1703_v56, %v1750_v52  ;;  %v1810_v49 = vpop.f32.mrf.mxu2  ;;  %v300_v56 = vadd.f32 %v1713_v2, %v1750_v52 }
 0x158   :  { %669 = vmatmul.f32.gmra.mxu2 %v1133_v3 }
 0x159   :  { %1134 = vtanh.f32 %v616_v1 }
 0x15d   :  { %1046 = vmatmul.msk.f32.gmra.mxu3 %vm125_vm1, %v1463_v21 }
 0x15e   :  { %v579_v10 = vpop.f32.mrf.mxu1 }
 0x15f   :  { %v1135_v14 = vpop.eup %1134  ;;  %v617_v45 = vadd.f32 %v579_v10, %v288_v11  ;;  %v297_v11 = vadd.f32 %v1708_v60, %v1750_v52  ;;  %v303_v60 = vadd.f32 %v1718_v8, %v1750_v52 }
 0x160   :  { %672 = vmatmul.f32.gmra.mxu2 %v1135_v14 }
 0x161   :  { %1136 = vtanh.f32 %v617_v45 }
 0x165   :  { %1047 = vmatmul.msk.f32.gmra.mxu3 %vm125_vm1, %v1477_v23 }
 0x166   :  { %v582_v50 = vpop.f32.mrf.mxu1 }
 0x167   :  { %v1137_v57 = vpop.eup %1136  ;;  %v618_v59 = vadd.f32 %v582_v50, %v291_v5  ;;  %v1818_v5 = vpop.f32.mrf.mxu2 }
 0x168   :  { %675 = vmatmul.f32.gmra.mxu2 %v1137_v57 }
 0x169   :  { %1138 = vtanh.f32 %v618_v59 }
 0x16d   :  { %1048 = vmatmul.msk.f32.gmra.mxu3 %vm125_vm1, %v1492_v25 }
 0x16e   :  { %v585_v0 = vpop.f32.mrf.mxu1 }
 0x16f   :  { %v1139_v3 = vpop.eup %1138  ;;  %v619_v1 = vadd.f32 %v585_v0, %v294_v58  ;;  %v1826_v2 = vpop.f32.mrf.mxu2 }
 0x170   :  { %678 = vmatmul.f32.gmra.mxu2 %v1139_v3 }
 0x171   :  { %1140 = vtanh.f32 %v619_v1  ;;  %v306_v1 = vadd.f32 %v1723_v15, %v1750_v52 }
 0x175   :  { %1049 = vmatmul.msk.f32.gmra.mxu3 %vm125_vm1, %v1507_v27 }
 0x176   :  { %v588_v10 = vpop.f32.mrf.mxu1 }
 0x177   :  { %v1141_v14 = vpop.eup %1140  ;;  %v620_v45 = vadd.f32 %v588_v10, %v297_v11  ;;  %v1832_v8 = vpop.f32.mrf.mxu2 }
 0x178   :  { %681 = vmatmul.f32.gmra.mxu2 %v1141_v14 }
 0x179   :  { %1142 = vtanh.f32 %v620_v45  ;;  %v309_v45 = vadd.f32 %v1728_v51, %v1750_v52  ;;  %v315_v51 = vadd.f32 %v1739_v9, %v1750_v52 }
 0x17d   :  { %1050 = vmatmul.msk.f32.gmra.mxu3 %vm125_vm1, %v1522_v29 }
 0x17e   :  { %v591_v50 = vpop.f32.mrf.mxu1 }
 0x17f   :  { %v1143_v57 = vpop.eup %1142  ;;  %v621_v59 = vadd.f32 %v591_v50, %v300_v56  ;;  %v1838_v15 = vpop.f32.mrf.mxu2 }
 0x180   :  { %684 = vmatmul.f32.gmra.mxu2 %v1143_v57 }
 0x181   :  { %1144 = vtanh.f32 %v621_v59  ;;  %v312_v59 = vadd.f32 %v1733_v53, %v1750_v52  ;;  %v318_v53 = vadd.f32 %v1745_v55, %v1750_v52  ;;  %v87_v55 = vld [vmem:[#allocation3 + $0x20] sm:$0xff] }
 0x185   :  { %1051 = vmatmul.msk.f32.gmra.mxu3 %vm125_vm1, %v1537_v31 }
 0x186   :  { %v594_v58 = vpop.f32.mrf.mxu1 }
 0x187   :  { %v1145_v0 = vpop.eup %1144  ;;  %v622_v3 = vadd.f32 %v594_v58, %v303_v60 }
 0x188   :  { %687 = vmatmul.f32.gmra.mxu2 %v1145_v0 }
 0x189   :  { %1146 = vtanh.f32 %v622_v3  ;;  %v1846_v3 = vpop.f32.mrf.mxu2 }
 0x18d   :  { %1052 = vmatmul.msk.f32.gmra.mxu3 %vm125_vm1, %v1552_v33 }
 0x18e   :  { %v597_v11 = vpop.f32.mrf.mxu1 }
 0x18f   :  { %v1147_v10 = vpop.eup %1146  ;;  %v623_v14 = vadd.f32 %v597_v11, %v306_v1 }
 0x190   :  { %690 = vmatmul.f32.gmra.mxu2 %v1147_v10 }
 0x191   :  { %1148 = vtanh.f32 %v623_v14 }
 0x196   :  { %v600_v56 = vpop.f32.mrf.mxu1 }
 0x197   :  { %v1149_v50 = vpop.eup %1148  ;;  %v624_v57 = vadd.f32 %v600_v56, %v309_v45  ;;  %v112_v45 = vld [vmem:[#allocation3 + $0xe8] sm:$0x7]  ;;  %v107_v56 = vld [vmem:[#allocation3 + $0xc0] sm:$0xff] }
 0x198   :  { %693 = vmatmul.f32.gmra.mxu2 %v1149_v50  ;;  %1053 = vmatpush.msk.msrb.mxu0 %vm174_vm0, %v112_v45  ;;  %v1855_v9 = vpop.f32.mrf.mxu3 }
 0x199   :  { %1150 = vtanh.f32 %v624_v57 }
 0x19a   :  { %461 = vmatpush.msrb.mxu0 %v107_v56 }
 0x19e   :  { %v603_v60 = vpop.f32.mrf.mxu1 }
 0x19f   :  { %v1151_v58 = vpop.eup %1150  ;;  %v625_v0 = vadd.f32 %v603_v60, %v312_v59  ;;  %v1852_v59 = vpop.f32.mrf.mxu2  ;;  %v102_v60 = vld [vmem:[#allocation3 + $0x98] sm:$0xff] }
 0x1a0   :  { %696 = vmatmul.f32.gmra.mxu2 %v1151_v58  ;;  %462 = vmatpush.msrb.mxu0 %v102_v60  ;;  %v97_v58 = vld [vmem:[#allocation3 + $0x70] sm:$0xff] }
 0x1a1   :  { %1152 = vtanh.f32 %v625_v0  ;;  %v92_v0 = vld [vmem:[#allocation3 + $0x48] sm:$0xff] }
 0x1a2   :  { %463 = vmatpush.msrb.mxu0 %v97_v58 }
 0x1a4   :  { %464 = vmatpush.msrb.mxu0 %v92_v0 }
 0x1a6   :  { %v606_v1 = vpop.f32.mrf.mxu1  ;;  %465 = vmatpush.msrb.mxu0 %v87_v55 }
 0x1a7   :  { %v1153_v11 = vpop.eup %1152  ;;  %v626_v10 = vadd.f32 %v606_v1, %v315_v51  ;;  %v1857_v51 = vpop.f32.mrf.mxu2  ;;  %1054 = vmatmul.msk.f32.vlgmr.msrb.gmra.mxu0 %vm125_vm1, %v1396_v7 }
 0x1a8   :  { %699 = vmatmul.f32.gmra.mxu2 %v1153_v11  ;;  %v1859_v1 = vpop.f32.mrf.mxu3  ;;  %838 = vmatpush.msra.mxu0 %v1472_v22  ;;  %v1866_v11 = vperm.slane %v1637_v54, 2 }
 0x1a9   :  { %1154 = vtanh.f32 %v626_v10 }
 0x1aa   :  { %839 = vmatpush.msra.mxu0 %v1487_v24  ;;  %v338_v10 = vadd.f32 %v1736_v63, %v1866_v11  ;;  %v341_v24 = vadd.f32 %v1741_v48, %v1866_v11 }
 0x1ac   :  { %840 = vmatpush.msra.mxu0 %v1502_v26 }
 0x1ae   :  { %v609_v14 = vpop.f32.mrf.mxu1  ;;  %841 = vmatpush.msra.mxu0 %v1517_v28 }
 0x1af   :  { %v1155_v50 = vpop.eup %1154  ;;  %v627_v57 = vadd.f32 %v609_v14, %v318_v53  ;;  %1055 = vmatmul.msk.f32.gmra.mxu0 %vm125_vm1, %v1411_v13 }
 0x1b0   :  { %702 = vmatmul.f32.gmra.mxu2 %v1155_v50  ;;  %842 = vmatpush.msra.mxu0 %v1532_v30  ;;  %v1875_v22 = vpop.f32.mrf.mxu3 }
 0x1b1   :  { %1156 = vtanh.f32 %v627_v57 }
 0x1b2   :  { %843 = vmatpush.msra.mxu0 %v1547_v32  ;;  %v344_v32 = vadd.f32 %v1759_v61, %v1866_v11 }
 0x1b4   :  { %844 = vmatpush.msra.mxu0 %v1560_v34 }
 0x1b6   :  { %845 = vmatpush.msra.mxu0 %v1566_v35 }
 0x1b7   :  { %v1157_v52 = vpop.eup %1156  ;;  %1056 = vmatmul.msk.f32.gmra.mxu0 %vm125_vm1, %v1425_v17 }
 0x1b8   :  { %705 = vmatmul.f32.gmra.mxu2 %v1157_v52  ;;  %846 = vmatpush.msra.mxu0 %v1574_v36  ;;  %v1886_v30 = vpop.f32.mrf.mxu3 }
 0x1ba   :  { %847 = vmatpush.msra.mxu0 %v1579_v37  ;;  %v347_v37 = vadd.f32 %v1770_v4, %v1866_v11 }
 0x1bc   :  { %848 = vmatpush.msra.mxu0 %v1586_v38 }
 0x1be   :  { %849 = vmatpush.msra.mxu0 %v1592_v39 }
 0x1bf   :  { %1057 = vmatmul.msk.f32.gmra.mxu0 %vm125_vm1, %v1439_v19 }
 0x1c0   :  { %850 = vmatpush.msra.mxu0 %v1600_v40  ;;  %v1897_v36 = vpop.f32.mrf.mxu3  ;;  %v350_v40 = vadd.f32 %v1781_v44, %v1866_v11 }
 0x1c2   :  { %851 = vmatpush.msra.mxu0 %v1605_v41 }
 0x1c3   :  { %v661_v53 = vpop.f32.mrf.mxu2 }
 0x1c4   :  { %v709_v7 = vadd.f32 %v661_v53, %v338_v10  ;;  %852 = vmatpush.msra.mxu0 %v1613_v43 }
 0x1c6   :  { %1158 = vtanh.f32 %v709_v7  ;;  %853 = vmatpush.msra.mxu0 %v1621_v46 }
 0x1c7   :  { %1058 = vmatmul.msk.f32.gmra.mxu0 %vm125_vm1, %v1448_v20  ;;  %v353_v20 = vadd.f32 %v1790_v62, %v1866_v11 }
 0x1c8   :  { %v1906_v41 = vpop.f32.mrf.mxu3 }
 0x1cb   :  { %v664_v13 = vpop.f32.mrf.mxu2 }
 0x1cc   :  { %v1159_v26 = vpop.eup %1158  ;;  %v710_v28 = vadd.f32 %v664_v13, %v341_v24 }
 0x1cd   :  { %757 = vmatmul.f32.vlgmr.msra.gmra.mxu3 %v1159_v26 }
 0x1ce   :  { %1160 = vtanh.f32 %v710_v28 }
 0x1cf   :  { %1059 = vmatmul.msk.f32.gmra.mxu0 %vm125_vm1, %v1391_v6  ;;  %v356_v6 = vadd.f32 %v1798_v42, %v1866_v11 }
 0x1d0   :  { %v1914_v44 = vpop.f32.mrf.mxu3 }
 0x1d3   :  { %v667_v17 = vpop.f32.mrf.mxu2 }
 0x1d4   :  { %v1161_v34 = vpop.eup %1160  ;;  %v711_v35 = vadd.f32 %v667_v17, %v344_v32 }
 0x1d5   :  { %760 = vmatmul.f32.gmra.mxu3 %v1161_v34 }
 0x1d6   :  { %1162 = vtanh.f32 %v711_v35 }
 0x1d7   :  { %1060 = vmatmul.msk.f32.gmra.mxu0 %vm125_vm1, %v1406_v12  ;;  %v359_v12 = vadd.f32 %v1804_v47, %v1866_v11 }
 0x1d8   :  { %v1920_v62 = vpop.f32.mrf.mxu3 }
 0x1db   :  { %v670_v19 = vpop.f32.mrf.mxu2 }
 0x1dc   :  { %v1163_v38 = vpop.eup %1162  ;;  %v712_v39 = vadd.f32 %v670_v19, %v347_v37 }
 0x1dd   :  { %763 = vmatmul.f32.gmra.mxu3 %v1163_v38 }
 0x1de   :  { %1164 = vtanh.f32 %v712_v39 }
 0x1df   :  { %1061 = vmatmul.msk.f32.gmra.mxu0 %vm125_vm1, %v1420_v16  ;;  %v362_v16 = vadd.f32 %v1810_v49, %v1866_v11 }
 0x1e0   :  { %v1926_v42 = vpop.f32.mrf.mxu3 }
 0x1e3   :  { %v673_v43 = vpop.f32.mrf.mxu2 }
 0x1e4   :  { %v1165_v46 = vpop.eup %1164  ;;  %v713_v63 = vadd.f32 %v673_v43, %v350_v40 }
 0x1e5   :  { %766 = vmatmul.f32.gmra.mxu3 %v1165_v46 }
 0x1e6   :  { %1166 = vtanh.f32 %v713_v63 }
 0x1e7   :  { %1062 = vmatmul.msk.f32.gmra.mxu0 %vm125_vm1, %v1434_v18  ;;  %v365_v18 = vadd.f32 %v1818_v5, %v1866_v11 }
 0x1e8   :  { %v1934_v47 = vpop.f32.mrf.mxu3 }
 0x1eb   :  { %v676_v48 = vpop.f32.mrf.mxu2 }
 0x1ec   :  { %v1167_v61 = vpop.eup %1166  ;;  %v714_v4 = vadd.f32 %v676_v48, %v353_v20 }
 0x1ed   :  { %769 = vmatmul.f32.gmra.mxu3 %v1167_v61  ;;  %v1977_v61 = vperm.slane %v1637_v54, 3 }
 0x1ee   :  { %1168 = vtanh.f32 %v714_v4 }
 0x1ef   :  { %1063 = vmatmul.msk.f32.gmra.mxu0 %vm125_vm1, %v1463_v21  ;;  %v368_v21 = vadd.f32 %v1826_v2, %v1866_v11  ;;  %v409_v54 = vadd.f32 %v1875_v22, %v1977_v61  ;;  %v415_v22 = vadd.f32 %v1897_v36, %v1977_v61  ;;  %v421_v36 = vadd.f32 %v1914_v44, %v1977_v61 }
 0x1f0   :  { %v1942_v5 = vpop.f32.mrf.mxu3 }
 0x1f3   :  { %v679_v14 = vpop.f32.mrf.mxu2 }
 0x1f4   :  { %v1169_v45 = vpop.eup %1168  ;;  %v715_v56 = vadd.f32 %v679_v14, %v356_v6 }
 0x1f5   :  { %772 = vmatmul.f32.gmra.mxu3 %v1169_v45  ;;  %v406_v45 = vadd.f32 %v1859_v1, %v1977_v61 }
 0x1f6   :  { %1170 = vtanh.f32 %v715_v56 }
 0x1f7   :  { %1064 = vmatmul.msk.f32.gmra.mxu0 %vm125_vm1, %v1477_v23  ;;  %v371_v23 = vadd.f32 %v1832_v8, %v1866_v11 }
 0x1f8   :  { %v1948_v2 = vpop.f32.mrf.mxu3 }
 0x1fb   :  { %v682_v50 = vpop.f32.mrf.mxu2 }
 0x1fc   :  { %v1171_v57 = vpop.eup %1170  ;;  %v716_v60 = vadd.f32 %v682_v50, %v359_v12 }
 0x1fd   :  { %775 = vmatmul.f32.gmra.mxu3 %v1171_v57 }
 0x1fe   :  { %1172 = vtanh.f32 %v716_v60 }
 0x1ff   :  { %1065 = vmatmul.msk.f32.gmra.mxu0 %vm125_vm1, %v1492_v25  ;;  %v374_v25 = vadd.f32 %v1838_v15, %v1866_v11 }
 0x200   :  { %v1954_v8 = vpop.f32.mrf.mxu3 }
 0x203   :  { %v685_v58 = vpop.f32.mrf.mxu2 }
 0x204   :  { %v1173_v0 = vpop.eup %1172  ;;  %v717_v55 = vadd.f32 %v685_v58, %v362_v16  ;;  %v412_v58 = vadd.f32 %v1886_v30, %v1977_v61  ;;  %v418_v30 = vadd.f32 %v1906_v41, %v1977_v61 }
 0x205   :  { %778 = vmatmul.f32.gmra.mxu3 %v1173_v0 }
 0x206   :  { %1174 = vtanh.f32 %v717_v55 }
 0x207   :  { %1066 = vmatmul.msk.f32.gmra.mxu0 %vm125_vm1, %v1507_v27  ;;  %v377_v27 = vadd.f32 %v1846_v3, %v1866_v11 }
 0x208   :  { %v1962_v15 = vpop.f32.mrf.mxu3 }
 0x20b   :  { %v688_v52 = vpop.f32.mrf.mxu2 }
 0x20c   :  { %v1175_v10 = vpop.eup %1174  ;;  %v718_v53 = vadd.f32 %v688_v52, %v365_v18 }
 0x20d   :  { %781 = vmatmul.f32.gmra.mxu3 %v1175_v10 }
 0x20e   :  { %1176 = vtanh.f32 %v718_v53 }
 0x20f   :  { %1067 = vmatmul.msk.f32.gmra.mxu0 %vm125_vm1, %v1522_v29  ;;  %v380_v29 = vadd.f32 %v1852_v59, %v1866_v11 }
 0x210   :  { %v1970_v20 = vpop.f32.mrf.mxu3 }
 0x213   :  { %v691_v49 = vpop.f32.mrf.mxu2 }
 0x214   :  { %v1177_v7 = vpop.eup %1176  ;;  %v719_v24 = vadd.f32 %v691_v49, %v368_v21 }
 0x215   :  { %784 = vmatmul.f32.gmra.mxu3 %v1177_v7 }
 0x216   :  { %1178 = vtanh.f32 %v719_v24 }
 0x217   :  { %1068 = vmatmul.msk.f32.gmra.mxu0 %vm125_vm1, %v1537_v31  ;;  %v383_v31 = vadd.f32 %v1857_v51, %v1866_v11  ;;  %v403_v51 = vadd.f32 %v1855_v9, %v1977_v61 }
 0x218   :  { %v1974_v48 = vpop.f32.mrf.mxu3 }
 0x21b   :  { %v694_v13 = vpop.f32.mrf.mxu2 }
 0x21c   :  { %v1179_v26 = vpop.eup %1178  ;;  %v720_v28 = vadd.f32 %v694_v13, %v371_v23 }
 0x21d   :  { %787 = vmatmul.f32.gmra.mxu3 %v1179_v26 }
 0x21e   :  { %1180 = vtanh.f32 %v720_v28 }
 0x21f   :  { %1069 = vmatmul.msk.f32.gmra.mxu0 %vm125_vm1, %v1552_v33 }
 0x223   :  { %v697_v32 = vpop.f32.mrf.mxu2 }
 0x224   :  { %v1181_v17 = vpop.eup %1180  ;;  %v721_v34 = vadd.f32 %v697_v32, %v374_v25  ;;  %v1966_v3 = vpop.f32.mrf.mxu0  ;;  %v424_v25 = vadd.f32 %v1920_v62, %v1977_v61  ;;  %v430_v62 = vadd.f32 %v1934_v47, %v1977_v61  ;;  %v436_v47 = vadd.f32 %v1948_v2, %v1977_v61 }
 0x225   :  { %790 = vmatmul.f32.gmra.mxu3 %v1181_v17 }
 0x226   :  { %1182 = vtanh.f32 %v721_v34 }
 0x22b   :  { %v700_v35 = vpop.f32.mrf.mxu2 }
 0x22c   :  { %v1183_v37 = vpop.eup %1182  ;;  %v722_v19 = vadd.f32 %v700_v35, %v377_v27  ;;  %v1972_v59 = vpop.f32.mrf.mxu0  ;;  %v427_v27 = vadd.f32 %v1926_v42, %v1977_v61  ;;  %v433_v42 = vadd.f32 %v1942_v5, %v1977_v61 }
 0x22d   :  { %793 = vmatmul.f32.gmra.mxu3 %v1183_v37 }
 0x22e   :  { %1184 = vtanh.f32 %v722_v19 }
 0x233   :  { %v703_v38 = vpop.f32.mrf.mxu2 }
 0x234   :  { %v1185_v39 = vpop.eup %1184  ;;  %v723_v40 = vadd.f32 %v703_v38, %v380_v29  ;;  %v1979_v4 = vpop.f32.mrf.mxu0 }
 0x235   :  { %796 = vmatmul.f32.gmra.mxu3 %v1185_v39 }
 0x236   :  { %1186 = vtanh.f32 %v723_v40 }
 0x23b   :  { %v706_v43 = vpop.f32.mrf.mxu2 }
 0x23c   :  { %v1187_v46 = vpop.eup %1186  ;;  %v724_v63 = vadd.f32 %v706_v43, %v383_v31  ;;  %v1983_v14 = vpop.f32.mrf.mxu0 }
 0x23d   :  { %799 = vmatmul.f32.gmra.mxu3 %v1187_v46 }
 0x23e   :  { %1188 = vtanh.f32 %v724_v63 }
 0x244   :  { %v1189_v33 = vpop.eup %1188  ;;  %v1989_v57 = vpop.f32.mrf.mxu0 }
 0x245   :  { %802 = vmatmul.f32.gmra.mxu3 %v1189_v33 }
 0x24c   :  { %v1993_v18 = vpop.f32.mrf.mxu0 }
 0x250   :  { %v758_v11 = vpop.f32.mrf.mxu3 }
 0x251   :  { %v806_v6 = vadd.f32 %v758_v11, %v403_v51 }
 0x253   :  { %1190 = vtanh.f32 %v806_v6  ;;  %v439_v6 = vadd.f32 %v1954_v8, %v1977_v61 }
 0x254   :  { %v1997_v21 = vpop.f32.mrf.mxu0 }
 0x258   :  { %v761_v56 = vpop.f32.mrf.mxu3 }
 0x259   :  { %v1191_v12 = vpop.eup %1190  ;;  %v807_v50 = vadd.f32 %v761_v56, %v406_v45 }
 0x25a   :  { %854 = vmatmul.f32.vlgmr.msra.gmra.mxu0 %v1191_v12 }
 0x25b   :  { %1192 = vtanh.f32 %v807_v50  ;;  %v442_v50 = vadd.f32 %v1962_v15, %v1977_v61 }
 0x25c   :  { %v2001_v23 = vpop.f32.mrf.mxu0 }
 0x260   :  { %v764_v60 = vpop.f32.mrf.mxu3 }
 0x261   :  { %v1193_v9 = vpop.eup %1192  ;;  %v808_v16 = vadd.f32 %v764_v60, %v409_v54 }
 0x262   :  { %857 = vmatmul.f32.gmra.mxu0 %v1193_v9 }
 0x263   :  { %1194 = vtanh.f32 %v808_v16  ;;  %v445_v16 = vadd.f32 %v1970_v20, %v1977_v61 }
 0x264   :  { %v2007_v32 = vpop.f32.mrf.mxu0 }
 0x268   :  { %v767_v0 = vpop.f32.mrf.mxu3 }
 0x269   :  { %v1195_v1 = vpop.eup %1194  ;;  %v809_v55 = vadd.f32 %v767_v0, %v412_v58 }
 0x26a   :  { %860 = vmatmul.f32.gmra.mxu0 %v1195_v1 }
 0x26b   :  { %1196 = vtanh.f32 %v809_v55  ;;  %v448_v55 = vadd.f32 %v1974_v48, %v1977_v61 }
 0x26c   :  { %v2011_v19 = vpop.f32.mrf.mxu0 }
 0x270   :  { %v770_v52 = vpop.f32.mrf.mxu3 }
 0x271   :  { %v1197_v10 = vpop.eup %1196  ;;  %v810_v53 = vadd.f32 %v770_v52, %v415_v22 }
 0x272   :  { %863 = vmatmul.f32.gmra.mxu0 %v1197_v10 }
 0x273   :  { %1198 = vtanh.f32 %v810_v53 }
 0x274   :  { %v2015_v40 = vpop.f32.mrf.mxu0 }
 0x278   :  { %v773_v49 = vpop.f32.mrf.mxu3 }
 0x279   :  { %v1199_v7 = vpop.eup %1198  ;;  %v811_v24 = vadd.f32 %v773_v49, %v418_v30 }
 0x27a   :  { %866 = vmatmul.f32.gmra.mxu0 %v1199_v7 }
 0x27b   :  { %1200 = vtanh.f32 %v811_v24 }
 0x27c   :  { %v2019_v63 = vpop.f32.mrf.mxu0 }
 0x280   :  { %v776_v13 = vpop.f32.mrf.mxu3 }
 0x281   :  { %v1201_v26 = vpop.eup %1200  ;;  %v812_v28 = vadd.f32 %v776_v13, %v421_v36  ;;  %v1258_v13 = vld [vmem:[#allocation5] sm:$0x1f] }
 0x282   :  { %869 = vmatmul.f32.gmra.mxu0 %v1201_v26  ;;  %v2041_v26 = vperm.slane %v1258_v13, 4 }
 0x283   :  { %1202 = vtanh.f32 %v812_v28 }
 0x284   :  { %v503_v45 = vpop.f32.mrf.mxu0  ;;  %v492_v28 = vadd.f32 %v2007_v32, %v2041_v26 }
 0x288   :  { %v779_v41 = vpop.f32.mrf.mxu3 }
 0x289   :  { %v1203_v17 = vpop.eup %1202  ;;  %v813_v34 = vadd.f32 %v779_v41, %v424_v25 }
 0x28a   :  { %872 = vmatmul.f32.gmra.mxu0 %v1203_v17  ;;  %v495_v17 = vadd.f32 %v2011_v19, %v2041_v26 }
 0x28b   :  { %1204 = vtanh.f32 %v813_v34 }
 0x28c   :  { %v506_v9 = vpop.f32.mrf.mxu0 }
 0x28d   :  { %v507_v32 = vadd.f32 %v506_v9, %v2041_v26 }
 0x290   :  { %v782_v35 = vpop.f32.mrf.mxu3 }
 0x291   :  { %v1205_v44 = vpop.eup %1204  ;;  %v814_v37 = vadd.f32 %v782_v35, %v427_v27 }
 0x292   :  { %875 = vmatmul.f32.gmra.mxu0 %v1205_v44 }
 0x293   :  { %1206 = vtanh.f32 %v814_v37 }
 0x294   :  { %v509_v1 = vpop.f32.mrf.mxu0 }
 0x298   :  { %v785_v29 = vpop.f32.mrf.mxu3 }
 0x299   :  { %v1207_v38 = vpop.eup %1206  ;;  %v815_v39 = vadd.f32 %v785_v29, %v430_v62 }
 0x29a   :  { %878 = vmatmul.f32.gmra.mxu0 %v1207_v38 }
 0x29b   :  { %1208 = vtanh.f32 %v815_v39 }
 0x29c   :  { %v512_v10 = vpop.f32.mrf.mxu0 }
 0x29d   :  { %v513_v38 = vadd.f32 %v512_v10, %v2041_v26  ;;  %v471_v10 = vadd.f32 %v1972_v59, %v2041_v26  ;;  %v935_v59 = vld [vmem:[#allocation7] sm:$0xff] }
 0x2a0   :  { %v788_v31 = vpop.f32.mrf.mxu3 }
 0x2a1   :  { %v1209_v43 = vpop.eup %1208  ;;  %v816_v46 = vadd.f32 %v788_v31, %v433_v42  ;;  %v510_v42 = vadd.f32 %v509_v1, %v2041_v26 }
 0x2a2   :  { %881 = vmatmul.f32.gmra.mxu0 %v1209_v43 }
 0x2a3   :  { %1210 = vtanh.f32 %v816_v46 }
 0x2a8   :  { %v791_v33 = vpop.f32.mrf.mxu3 }
 0x2a9   :  { %v1211_v51 = vpop.eup %1210  ;;  %v817_v11 = vadd.f32 %v791_v33, %v436_v47  ;;  %v504_v47 = vadd.f32 %v503_v45, %v2041_v26 }
 0x2aa   :  { %884 = vmatmul.f32.gmra.mxu0 %v1211_v51 }
 0x2ab   :  { %1212 = vtanh.f32 %v817_v11  ;;  %v501_v11 = vadd.f32 %v2019_v63, %v2041_v26  ;;  %v489_v63 = vadd.f32 %v2001_v23, %v2041_v26  ;;  %v480_v23 = vadd.f32 %v1989_v57, %v2041_v26 }
 0x2b0   :  { %v794_v5 = vpop.f32.mrf.mxu3 }
 0x2b1   :  { %v1213_v56 = vpop.eup %1212  ;;  %v818_v12 = vadd.f32 %v794_v5, %v439_v6 }
 0x2b2   :  { %887 = vmatmul.f32.gmra.mxu0 %v1213_v56  ;;  %v498_v56 = vadd.f32 %v2015_v40, %v2041_v26  ;;  %v486_v40 = vadd.f32 %v1997_v21, %v2041_v26  ;;  %v477_v21 = vadd.f32 %v1983_v14, %v2041_v26 }
 0x2b3   :  { %1214 = vtanh.f32 %v818_v12 }
 0x2b8   :  { %v797_v54 = vpop.f32.mrf.mxu3 }
 0x2b9   :  { %v1215_v60 = vpop.eup %1214  ;;  %v819_v2 = vadd.f32 %v797_v54, %v442_v50 }
 0x2ba   :  { %890 = vmatmul.f32.gmra.mxu0 %v1215_v60 }
 0x2bb   :  { %1216 = vtanh.f32 %v819_v2 }
 0x2c0   :  { %v800_v58 = vpop.f32.mrf.mxu3 }
 0x2c1   :  { %v1217_v8 = vpop.eup %1216  ;;  %v820_v0 = vadd.f32 %v800_v58, %v445_v16  ;;  %v483_v58 = vadd.f32 %v1993_v18, %v2041_v26 }
 0x2c2   :  { %893 = vmatmul.f32.gmra.mxu0 %v1217_v8 }
 0x2c3   :  { %1218 = vtanh.f32 %v820_v0 }
 0x2c8   :  { %v803_v22 = vpop.f32.mrf.mxu3 }
 0x2c9   :  { %v1219_v15 = vpop.eup %1218  ;;  %v821_v52 = vadd.f32 %v803_v22, %v448_v55 }
 0x2ca   :  { %896 = vmatmul.f32.gmra.mxu0 %v1219_v15  ;;  %v474_v15 = vadd.f32 %v1979_v4, %v2041_v26 }
 0x2cb   :  { %1220 = vtanh.f32 %v821_v52 }
 0x2d1   :  { %v1221_v53 = vpop.eup %1220 }
 0x2d2   :  { %899 = vmatmul.f32.gmra.mxu0 %v1221_v53 }
 0x2d7   :  { %v2031_v30 = vpop.f32.mrf.mxu0 }
 0x2df   :  { %v2033_v20 = vpop.f32.mrf.mxu0 }
 0x2e0   :  { %v904_v53 = vadd.f32 %v2033_v20, %v471_v10  ;;  %v957_v20 = vstv %s2087_s5 }
 0x2e7   :  { %v2035_v49 = vpop.f32.mrf.mxu0 }
 0x2e8   :  { %v905_v52 = vadd.f32 %v2035_v49, %v474_v15 }
 0x2ef   :  { %v2037_v7 = vpop.f32.mrf.mxu0 }
 0x2f0   :  { %v906_v22 = vadd.f32 %v2037_v7, %v477_v21  ;;  %v468_v7 = vadd.f32 %v1966_v3, %v2041_v26 }
 0x2f7   :  { %v2039_v24 = vpop.f32.mrf.mxu0 }
 0x2f8   :  { %v907_v1 = vadd.f32 %v2039_v24, %v480_v23  ;;  %v903_v24 = vadd.f32 %v2031_v30, %v468_v7 }
 0x2ff   :  { %v870_v36 = vpop.f32.mrf.mxu0 }
 0x300   :  { %v908_v8 = vadd.f32 %v870_v36, %v483_v58 }
 0x307   :  { %v873_v48 = vpop.f32.mrf.mxu0 }
 0x308   :  { %v909_v9 = vadd.f32 %v873_v48, %v486_v40 }
 0x30f   :  { %v876_v61 = vpop.f32.mrf.mxu0 }
 0x310   :  { %v910_v60 = vadd.f32 %v876_v61, %v489_v63 }
 0x317   :  { %v879_v25 = vpop.f32.mrf.mxu0 }
 0x318   :  { %v911_v41 = vadd.f32 %v879_v25, %v492_v28 }
 0x31f   :  { %v882_v34 = vpop.f32.mrf.mxu0 }
 0x320   :  { %v912_v27 = vadd.f32 %v882_v34, %v495_v17 }
 0x327   :  { %v885_v35 = vpop.f32.mrf.mxu0 }
 0x328   :  { %v913_v12 = vadd.f32 %v885_v35, %v498_v56 }
 0x32f   :  { %v888_v44 = vpop.f32.mrf.mxu0 }
 0x330   :  { %v914_v6 = vadd.f32 %v888_v44, %v501_v11 }
 0x337   :  { %v891_v37 = vpop.f32.mrf.mxu0 }
 0x338   :  { %v915_v33 = vadd.f32 %v891_v37, %v504_v47 }
 0x33f   :  { %v894_v62 = vpop.f32.mrf.mxu0 }
 0x340   :  { %v916_v46 = vadd.f32 %v894_v62, %v507_v32 }
 0x347   :  { %v897_v29 = vpop.f32.mrf.mxu0 }
 0x348   :  { %v917_v43 = vadd.f32 %v897_v29, %v510_v42 }
 0x34f   :  { %v900_v39 = vpop.f32.mrf.mxu0 }
 0x350   :  { %v918_v31 = vadd.f32 %v900_v39, %v513_v38 }
 0x352   :  { %1222 = vtanh.f32 %v918_v31 }
 0x353   :  { %1224 = vtanh.f32 %v917_v43 }
 0x354   :  { %1226 = vtanh.f32 %v916_v46 }
 0x355   :  { %1228 = vtanh.f32 %v915_v33 }
 0x356   :  { %1230 = vtanh.f32 %v914_v6 }
 0x357   :  { %1232 = vtanh.f32 %v913_v12 }
 0x358   :  { %v1223_v19 = vpop.eup %1222  ;;  %1234 = vtanh.f32 %v912_v27 }
 0x359   :  { %936 = vmatpush.xpose.msrb.mxu1 %v1223_v19  ;;  %v1225_v51 = vpop.eup %1224  ;;  %1236 = vtanh.f32 %v911_v41 }
 0x35a   :  { %v1227_v5 = vpop.eup %1226  ;;  %1238 = vtanh.f32 %v910_v60 }
 0x35b   :  { %v1229_v50 = vpop.eup %1228  ;;  %1240 = vtanh.f32 %v909_v9 }
 0x35c   :  { %v1231_v45 = vpop.eup %1230  ;;  %1242 = vtanh.f32 %v908_v8 }
 0x35d   :  { %937 = vmatpush.xpose.msrb.mxu1 %v1225_v51  ;;  %v1233_v54 = vpop.eup %1232  ;;  %1244 = vtanh.f32 %v907_v1 }
 0x35e   :  { %v1235_v2 = vpop.eup %1234  ;;  %1246 = vtanh.f32 %v906_v22 }
 0x35f   :  { %v1237_v16 = vpop.eup %1236  ;;  %1248 = vtanh.f32 %v905_v52 }
 0x360   :  { %v1239_v0 = vpop.eup %1238  ;;  %1250 = vtanh.f32 %v904_v53 }
 0x361   :  { %938 = vmatpush.xpose.msrb.mxu1 %v1227_v5  ;;  %v1241_v55 = vpop.eup %1240  ;;  %1252 = vtanh.f32 %v903_v24 }
 0x362   :  { %v1243_v18 = vpop.eup %1242 }
 0x363   :  { %v1245_v57 = vpop.eup %1244 }
 0x364   :  { %v1247_v14 = vpop.eup %1246 }
 0x365   :  { %939 = vmatpush.xpose.msrb.mxu1 %v1229_v50  ;;  %v1249_v4 = vpop.eup %1248 }
 0x366   :  { %v1251_v49 = vpop.eup %1250 }
 0x367   :  { %v1253_v36 = vpop.eup %1252 }
 0x369   :  { %940 = vmatpush.xpose.msrb.mxu1 %v1231_v45 }
 0x36d   :  { %941 = vmatpush.xpose.msrb.mxu1 %v1233_v54 }
 0x371   :  { %942 = vmatpush.xpose.msrb.mxu1 %v1235_v2 }
 0x375   :  { %943 = vmatpush.xpose.msrb.mxu1 %v1237_v16 }
 0x379   :  { %944 = vmatpush.xpose.msrb.mxu1 %v1239_v0 }
 0x37d   :  { %945 = vmatpush.xpose.msrb.mxu1 %v1241_v55 }
 0x381   :  { %946 = vmatpush.xpose.msrb.mxu1 %v1243_v18 }
 0x385   :  { %947 = vmatpush.xpose.msrb.mxu1 %v1245_v57 }
 0x389   :  { %948 = vmatpush.xpose.msrb.mxu1 %v1247_v14 }
 0x38d   :  { %949 = vmatpush.xpose.msrb.mxu1 %v1249_v4 }
 0x391   :  { %950 = vmatpush.xpose.msrb.mxu1 %v1251_v49 }
 0x395   :  { %951 = vmatpush.xpose.msrb.mxu1 %v1253_v36 }
 0x398   :  { %952 = vmatmul.f32.vlgmr.msrb.gmra.mxu1 %v935_v59 }
 0x415   :  { %v953_v48 = vpop.f32.mrf.mxu1 }
 0x416   :  { %v958_v61 = vadd.f32 %v957_v20, %v953_v48 }
 0x418   :  { %v1070_v3 = vmul.f32 -1.442695, %v958_v61 }
 0x41a   :  { %1254 = vpow2.f32 %v1070_v3 }
 0x420   :  { %v1255_v13 = vpop.eup %1254 }
 0x421   :  { %v962_v30 = vadd.f32 1.0, %v1255_v13 }
 0x423   :  { %1256 = vrcp.f32 %v962_v30  ;;  %v974_v41 = vand.u32 2147483648, %v962_v30  ;;  %v972_v34 = vand.u32 2147483647, %v962_v30  ;;  %vm968_vm3 = vweird.f32 %v962_v30 }
 0x425   :  { %v975_v35 = vor.u32 1.1754944e-38, %v974_v41  ;;  %vm973_vm5 = vcmp.eq.f32.partialorder %v972_v34, 8.507059e+37 }
 0x429   :  { %v1257_v26 = vpop.eup %1256 }
 0x42a   :  { %v964_v28 = vmul.f32 %v1257_v26, %v962_v30  ;;  %vm969_vm2 = vweird.f32 %v1257_v26 }
 0x42b   :  { %vm970_vm4 = vmor %vm968_vm3, %vm969_vm2 }
 0x42c   :  { %v965_v25 = vsub.f32 1.0, %v964_v28 }
 0x42e   :  { %v966_v17 = vmul.f32 %v1257_v26, %v965_v25 }
 0x430   :  { %v967_v27 = vadd.f32 %v1257_v26, %v966_v17 }
 0x432   :  { %v971_v44 = vsel %vm970_vm4, %v1257_v26, %v967_v27 }
 0x433   :  { %v976_v37 = vsel %vm973_vm5, %v975_v35, %v971_v44 }
 0x434   :  { %978 = vst [vmem:[%s2088_s6] sm:$0x1] %v976_v37 }
 0x435   :  { %983 = vsyncpa [#allocation4], 1 }
 0x436   :  { %984 = vsyncpa [#allocation6], 1 }

</bundles_post_ra>
